<compile_context>
chip_gen: v6e
topology: v6e:2x2x1
jax: 0.10.0
libtpu: 0.0.40
codegen_flags: <defaults>
</compile_context>

<pallas_src>
import functools
import math

import jax
import jax.numpy as jnp
from jax.experimental import pallas as pl
from jax.experimental.pallas import tpu as pltpu


def _layer_norm(x, gamma, beta, eps=1e-5):
    mean = jnp.mean(x, axis=-1, keepdims=True)
    var = jnp.mean((x - mean) ** 2, axis=-1, keepdims=True)
    return (x - mean) * jax.lax.rsqrt(var + eps) * gamma + beta


def _gelu_exact(x):
    # F.gelu default: 0.5 * x * (1 + erf(x / sqrt(2)))
    return 0.5 * x * (1.0 + jax.lax.erf(x * jnp.float32(1.0 / math.sqrt(2.0))))


def decoder_layer_kernel(x_ref, bias_ref,
                         wqkv_ref, wo_h_ref, bo_ref,
                         g1_ref, be1_ref,
                         w1_ref, b1_ref, w2_ref, b2_ref,
                         g2_ref, be2_ref,
                         out_ref, prob_ref,
                         q_scr, k_scr, v_scr,
                         *, num_heads, dim_head):
    x = x_ref[0]                       # [S, H] float32
    bias = bias_ref[...]               # [S, S] additive mask bias (-1e9 on masked)
    H = num_heads * dim_head
    dh = dim_head
    scale = jnp.float32(1.0 / math.sqrt(dh))

    # --- fused QKV projection (single MXU matmul, pre-transposed weights) ---
    qkv = jnp.dot(x, wqkv_ref[...], preferred_element_type=jnp.float32)   # [S, 3H]

    # split into head-major [nh, S, dh] layout via VMEM scratch (no relayout
    # transposes in the kernel); fold the softmax scale into q once.
    for h in range(num_heads):
        q_scr[h] = qkv[:, h * dh:(h + 1) * dh] * scale
        k_scr[h] = qkv[:, H + h * dh:H + (h + 1) * dh]
        v_scr[h] = qkv[:, 2 * H + h * dh:2 * H + (h + 1) * dh]

    q3 = q_scr[...]                    # [nh, S, dh]
    k3 = k_scr[...]
    v3 = v_scr[...]

    # --- batched multi-head attention ---------------------------------------
    s = jnp.einsum('hqd,hkd->hqk', q3, k3,
                   preferred_element_type=jnp.float32)                    # [nh, S, S]
    s = s + bias                                                          # additive mask
    m = jnp.max(s, axis=-1, keepdims=True)
    e = jnp.exp(s - m)
    denom = jnp.sum(e, axis=-1, keepdims=True)
    p = e * pl.reciprocal(denom, approx=True)                             # softmax
    prob_ref[0] = p                                                       # one batched store

    ctx = jnp.einsum('hqk,hkd->hqd', p, v3,
                     preferred_element_type=jnp.float32)                  # [nh, S, dh]

    # output projection: sum_h ctx[h] @ Wo_h  (Wo_h = [dh, H]); avoids concat.
    proj = jnp.einsum('hsd,hdo->hso', ctx, wo_h_ref[...],
                      preferred_element_type=jnp.float32)                 # [nh, S, H]
    attn_out = jnp.sum(proj, axis=0) + bo_ref[...]                        # [S, H]

    # residual + layer norm 1
    h1 = _layer_norm(x + attn_out, g1_ref[...], be1_ref[...])

    # --- feed-forward (Conv1d k=1 == Linear), weights pre-transposed --------
    ff = jnp.dot(h1, w1_ref[...], preferred_element_type=jnp.float32) + b1_ref[...]
    ff = _gelu_exact(ff)
    ff = jnp.dot(ff, w2_ref[...], preferred_element_type=jnp.float32) + b2_ref[...]

    # residual + layer norm 2
    out_ref[0] = _layer_norm(h1 + ff, g2_ref[...], be2_ref[...])


def gpt2_decoder_layer(x, mask, params, *, num_heads, dim_head):
    B, S, H = x.shape
    F_ = params["w_ffn1"].shape[0]

    # --- wrapper-side weight packing (no .T inside the kernel) --------------
    wqkv = jnp.concatenate(
        [params["wq"].T, params["wk"].T, params["wv"].T], axis=1)      # [H, 3H]
    wo_h = params["wo"].T.reshape(num_heads, dim_head, H)              # [nh, dh, H]
    w1_t = params["w_ffn1"].T                                          # [H, F]
    w2_t = params["w_ffn2"].T                                          # [F, H]
    # additive mask bias: masked positions get -1e9 (same softmax result as
    # masked_fill_), computed once outside the kernel.
    bias = mask.astype(jnp.float32) * jnp.float32(-1e9)                # [S, S]

    kernel = functools.partial(decoder_layer_kernel,
                               num_heads=num_heads, dim_head=dim_head)

    def full_spec(shape):
        nd = len(shape)
        return pl.BlockSpec(shape, lambda b, _nd=nd: (0,) * _nd)

    in_specs = [
        pl.BlockSpec((1, S, H), lambda b: (b, 0, 0)),     # x: one batch row / step
        full_spec((S, S)),                                # additive mask bias
        full_spec((H, 3 * H)),                            # packed Wqkv (pre-transposed)
        full_spec((num_heads, dim_head, H)),              # Wo per head
        full_spec((1, H)),                                # bo
        full_spec((1, H)), full_spec((1, H)),             # ln1 gamma, beta
        full_spec((H, F_)), full_spec((1, F_)),           # ffn1 W^T, b
        full_spec((F_, H)), full_spec((1, H)),            # ffn2 W^T, b
        full_spec((1, H)), full_spec((1, H)),             # ln2 gamma, beta
    ]
    out_specs = [
        pl.BlockSpec((1, S, H), lambda b: (b, 0, 0)),
        pl.BlockSpec((1, num_heads, S, S), lambda b: (b, 0, 0, 0)),
    ]
    out_shape = [
        jax.ShapeDtypeStruct((B, S, H), jnp.float32),
        jax.ShapeDtypeStruct((B, num_heads, S, S), jnp.float32),
    ]
    scratch_shapes = [
        pltpu.VMEM((num_heads, S, dim_head), jnp.float32),   # q (head-major)
        pltpu.VMEM((num_heads, S, dim_head), jnp.float32),   # k
        pltpu.VMEM((num_heads, S, dim_head), jnp.float32),   # v
    ]

    return pl.pallas_call(
        kernel,
        grid=(B,),
        in_specs=in_specs,
        out_specs=out_specs,
        out_shape=out_shape,
        scratch_shapes=scratch_shapes,
        compiler_params=pltpu.CompilerParams(
            dimension_semantics=("parallel",)),   # batch elems independent -> megacore
    )(x, bias, wqkv, wo_h,
      params["bo"], params["g1"], params["be1"],
      w1_t, params["b_ffn1"], w2_t, params["b_ffn2"],
      params["g2"], params["be2"])


def init_params(key, dim_hidden, dim_ffn):
    # Parameters kept in PyTorch layouts; the wrapper repacks/transposes them.
    H, F_ = dim_hidden, dim_ffn
    ks = jax.random.split(key, 8)
    n = lambda k, shape, s=0.02: (s * jax.random.normal(k, shape)).astype(jnp.float32)
    return {
        "wq": n(ks[0], (H, H)),          # Linear(H->H, bias=False), weight [out, in]
        "wk": n(ks[1], (H, H)),
        "wv": n(ks[2], (H, H)),
        "wo": n(ks[3], (H, H)),          # fc1 in MHA
        "bo": jnp.zeros((1, H), jnp.float32),
        "g1": jnp.ones((1, H), jnp.float32),
        "be1": jnp.zeros((1, H), jnp.float32),
        "w_ffn1": n(ks[4], (F_, H)),     # Conv1d(H->F, k=1) weight squeezed
        "b_ffn1": n(ks[5], (1, F_)),
        "w_ffn2": n(ks[6], (H, F_)),     # Conv1d(F->H, k=1) weight squeezed
        "b_ffn2": n(ks[7], (1, H)),
        "g2": jnp.ones((1, H), jnp.float32),
        "be2": jnp.zeros((1, H), jnp.float32),
    }


if __name__ == "__main__":
    # small config consistent with the module: dim_hidden == num_heads * dim_head
    B, S = 2, 8
    num_heads, dim_head = 4, 8
    dim_hidden = num_heads * dim_head        # 32
    dim_ffn = 64

    key = jax.random.PRNGKey(0)
    kx, kp = jax.random.split(key)
    x = jax.random.normal(kx, (B, S, dim_hidden), dtype=jnp.float32)

    # causal mask (1 == masked), same for every batch element
    causal = (jnp.arange(S)[None, :] > jnp.arange(S)[:, None]).astype(jnp.int32)

    params = init_params(kp, dim_hidden, dim_ffn)

    out, attn_prob = gpt2_decoder_layer(
        x, causal, params, num_heads=num_heads, dim_head=dim_head)
    out = jax.block_until_ready(out)
    attn_prob = jax.block_until_ready(attn_prob)

    assert out.shape == (B, S, dim_hidden)
    assert attn_prob.shape == (B, num_heads, S, S)
    assert bool(jnp.all(jnp.isfinite(out)))
    assert bool(jnp.all(jnp.isfinite(attn_prob)))
    print("KERNEL_OK")
</pallas_src>

<mosaic_0001>
module attributes {stable_mosaic.version = 11 : i64} {
  func.func @decoder_layer_kernel(%arg0: i32, %arg1: memref<1x8x32xf32, #tpu.memory_space<vmem>>, %arg2: memref<8x8xf32, #tpu.memory_space<vmem>>, %arg3: memref<32x96xf32, #tpu.memory_space<vmem>>, %arg4: memref<4x8x32xf32, #tpu.memory_space<vmem>>, %arg5: memref<1x32xf32, #tpu.memory_space<vmem>>, %arg6: memref<1x32xf32, #tpu.memory_space<vmem>>, %arg7: memref<1x32xf32, #tpu.memory_space<vmem>>, %arg8: memref<32x64xf32, #tpu.memory_space<vmem>>, %arg9: memref<1x64xf32, #tpu.memory_space<vmem>>, %arg10: memref<64x32xf32, #tpu.memory_space<vmem>>, %arg11: memref<1x32xf32, #tpu.memory_space<vmem>>, %arg12: memref<1x32xf32, #tpu.memory_space<vmem>>, %arg13: memref<1x32xf32, #tpu.memory_space<vmem>>, %arg14: memref<1x8x32xf32, #tpu.memory_space<vmem>>, %arg15: memref<1x4x8x8xf32, #tpu.memory_space<vmem>>, %arg16: memref<4x8x8xf32, #tpu.memory_space<vmem>>, %arg17: memref<4x8x8xf32, #tpu.memory_space<vmem>>, %arg18: memref<4x8x8xf32, #tpu.memory_space<vmem>>) attributes {dimension_semantics = [#tpu.dimension_semantics<parallel>], iteration_bounds = array<i64: 2>, scalar_prefetch = 0 : i64, scratch_operands = 3 : i64, tpu.core_type = #tpu.core_type<tc>, window_params = [{transform_indices = @transform_0, window_bounds = array<i64: 1, 8, 32>}, {pipeline_mode = #tpu.pipeline_mode<synchronous>, transform_indices = @transform_1, window_bounds = array<i64: 8, 8>}, {pipeline_mode = #tpu.pipeline_mode<synchronous>, transform_indices = @transform_2, window_bounds = array<i64: 32, 96>}, {pipeline_mode = #tpu.pipeline_mode<synchronous>, transform_indices = @transform_3, window_bounds = array<i64: 4, 8, 32>}, {pipeline_mode = #tpu.pipeline_mode<synchronous>, transform_indices = @transform_4, window_bounds = array<i64: 1, 32>}, {pipeline_mode = #tpu.pipeline_mode<synchronous>, transform_indices = @transform_5, window_bounds = array<i64: 1, 32>}, {pipeline_mode = #tpu.pipeline_mode<synchronous>, transform_indices = @transform_6, window_bounds = array<i64: 1, 32>}, {pipeline_mode = #tpu.pipeline_mode<synchronous>, transform_indices = @transform_7, window_bounds = array<i64: 32, 64>}, {pipeline_mode = #tpu.pipeline_mode<synchronous>, transform_indices = @transform_8, window_bounds = array<i64: 1, 64>}, {pipeline_mode = #tpu.pipeline_mode<synchronous>, transform_indices = @transform_9, window_bounds = array<i64: 64, 32>}, {pipeline_mode = #tpu.pipeline_mode<synchronous>, transform_indices = @transform_10, window_bounds = array<i64: 1, 32>}, {pipeline_mode = #tpu.pipeline_mode<synchronous>, transform_indices = @transform_11, window_bounds = array<i64: 1, 32>}, {pipeline_mode = #tpu.pipeline_mode<synchronous>, transform_indices = @transform_12, window_bounds = array<i64: 1, 32>}, {transform_indices = @transform_13, window_bounds = array<i64: 1, 8, 32>}, {transform_indices = @transform_14, window_bounds = array<i64: 1, 4, 8, 8>}]} {
    %c0 = arith.constant 0 : index
    %c0_0 = arith.constant 0 : index
    %c0_1 = arith.constant 0 : index
    %0 = vector.load %arg1[%c0, %c0_0, %c0_1] : memref<1x8x32xf32, #tpu.memory_space<vmem>>, vector<1x8x32xf32>
    %1 = vector.shape_cast %0 : vector<1x8x32xf32> to vector<8x32xf32>
    %c0_2 = arith.constant 0 : index
    %c0_3 = arith.constant 0 : index
    %2 = vector.load %arg2[%c0_2, %c0_3] : memref<8x8xf32, #tpu.memory_space<vmem>>, vector<8x8xf32>
    %c0_4 = arith.constant 0 : index
    %c0_5 = arith.constant 0 : index
    %3 = vector.load %arg3[%c0_4, %c0_5] : memref<32x96xf32, #tpu.memory_space<vmem>>, vector<32x96xf32>
    %cst = arith.constant dense<0.000000e+00> : vector<8x96xf32>
    %4 = tpu.matmul %1, %3, %cst {dimension_numbers = #tpu.dot_dimension_numbers<[1], [0], [0], [1], [0, 0, 1, 1], [], []>} : vector<8x32xf32>, vector<32x96xf32>, vector<8x96xf32> -> vector<8x96xf32>
    %5 = vector.extract_strided_slice %4 {offsets = [0, 0], sizes = [8, 8], strides = [1, 1]} : vector<8x96xf32> to vector<8x8xf32>
    %cst_6 = arith.constant 0.353553385 : f32
    %6 = vector.broadcast %cst_6 : f32 to vector<8x8xf32>
    %7 = arith.mulf %5, %6 : vector<8x8xf32>
    %c0_7 = arith.constant 0 : index
    %c0_8 = arith.constant 0 : index
    %c0_9 = arith.constant 0 : index
    %8 = vector.load %arg16[%c0_7, %c0_8, %c0_9] : memref<4x8x8xf32, #tpu.memory_space<vmem>>, vector<1x8x8xf32>
    %9 = vector.shape_cast %8 : vector<1x8x8xf32> to vector<8x8xf32>
    %10 = vector.shape_cast %7 : vector<8x8xf32> to vector<1x8x8xf32>
    tpu.vector_store %arg16[%c0_7, %c0_8, %c0_9], %10 {strides = array<i32>} : memref<4x8x8xf32, #tpu.memory_space<vmem>>, vector<1x8x8xf32>,
    %11 = vector.extract_strided_slice %4 {offsets = [0, 32], sizes = [8, 8], strides = [1, 1]} : vector<8x96xf32> to vector<8x8xf32>
    %c0_10 = arith.constant 0 : index
    %c0_11 = arith.constant 0 : index
    %c0_12 = arith.constant 0 : index
    %12 = vector.load %arg17[%c0_10, %c0_11, %c0_12] : memref<4x8x8xf32, #tpu.memory_space<vmem>>, vector<1x8x8xf32>
    %13 = vector.shape_cast %12 : vector<1x8x8xf32> to vector<8x8xf32>
    %14 = vector.shape_cast %11 : vector<8x8xf32> to vector<1x8x8xf32>
    tpu.vector_store %arg17[%c0_10, %c0_11, %c0_12], %14 {strides = array<i32>} : memref<4x8x8xf32, #tpu.memory_space<vmem>>, vector<1x8x8xf32>,
    %15 = vector.extract_strided_slice %4 {offsets = [0, 64], sizes = [8, 8], strides = [1, 1]} : vector<8x96xf32> to vector<8x8xf32>
    %c0_13 = arith.constant 0 : index
    %c0_14 = arith.constant 0 : index
    %c0_15 = arith.constant 0 : index
    %16 = vector.load %arg18[%c0_13, %c0_14, %c0_15] : memref<4x8x8xf32, #tpu.memory_space<vmem>>, vector<1x8x8xf32>
    %17 = vector.shape_cast %16 : vector<1x8x8xf32> to vector<8x8xf32>
    %18 = vector.shape_cast %15 : vector<8x8xf32> to vector<1x8x8xf32>
    tpu.vector_store %arg18[%c0_13, %c0_14, %c0_15], %18 {strides = array<i32>} : memref<4x8x8xf32, #tpu.memory_space<vmem>>, vector<1x8x8xf32>,
    %19 = vector.extract_strided_slice %4 {offsets = [0, 8], sizes = [8, 8], strides = [1, 1]} : vector<8x96xf32> to vector<8x8xf32>
    %cst_16 = arith.constant 0.353553385 : f32
    %20 = vector.broadcast %cst_16 : f32 to vector<8x8xf32>
    %21 = arith.mulf %19, %20 : vector<8x8xf32>
    %c1 = arith.constant 1 : index
    %c0_17 = arith.constant 0 : index
    %c0_18 = arith.constant 0 : index
    %22 = vector.load %arg16[%c1, %c0_17, %c0_18] : memref<4x8x8xf32, #tpu.memory_space<vmem>>, vector<1x8x8xf32>
    %23 = vector.shape_cast %22 : vector<1x8x8xf32> to vector<8x8xf32>
    %24 = vector.shape_cast %21 : vector<8x8xf32> to vector<1x8x8xf32>
    tpu.vector_store %arg16[%c1, %c0_17, %c0_18], %24 {strides = array<i32>} : memref<4x8x8xf32, #tpu.memory_space<vmem>>, vector<1x8x8xf32>,
    %25 = vector.extract_strided_slice %4 {offsets = [0, 40], sizes = [8, 8], strides = [1, 1]} : vector<8x96xf32> to vector<8x8xf32>
    %c1_19 = arith.constant 1 : index
    %c0_20 = arith.constant 0 : index
    %c0_21 = arith.constant 0 : index
    %26 = vector.load %arg17[%c1_19, %c0_20, %c0_21] : memref<4x8x8xf32, #tpu.memory_space<vmem>>, vector<1x8x8xf32>
    %27 = vector.shape_cast %26 : vector<1x8x8xf32> to vector<8x8xf32>
    %28 = vector.shape_cast %25 : vector<8x8xf32> to vector<1x8x8xf32>
    tpu.vector_store %arg17[%c1_19, %c0_20, %c0_21], %28 {strides = array<i32>} : memref<4x8x8xf32, #tpu.memory_space<vmem>>, vector<1x8x8xf32>,
    %29 = vector.extract_strided_slice %4 {offsets = [0, 72], sizes = [8, 8], strides = [1, 1]} : vector<8x96xf32> to vector<8x8xf32>
    %c1_22 = arith.constant 1 : index
    %c0_23 = arith.constant 0 : index
    %c0_24 = arith.constant 0 : index
    %30 = vector.load %arg18[%c1_22, %c0_23, %c0_24] : memref<4x8x8xf32, #tpu.memory_space<vmem>>, vector<1x8x8xf32>
    %31 = vector.shape_cast %30 : vector<1x8x8xf32> to vector<8x8xf32>
    %32 = vector.shape_cast %29 : vector<8x8xf32> to vector<1x8x8xf32>
    tpu.vector_store %arg18[%c1_22, %c0_23, %c0_24], %32 {strides = array<i32>} : memref<4x8x8xf32, #tpu.memory_space<vmem>>, vector<1x8x8xf32>,
    %33 = vector.extract_strided_slice %4 {offsets = [0, 16], sizes = [8, 8], strides = [1, 1]} : vector<8x96xf32> to vector<8x8xf32>
    %cst_25 = arith.constant 0.353553385 : f32
    %34 = vector.broadcast %cst_25 : f32 to vector<8x8xf32>
    %35 = arith.mulf %33, %34 : vector<8x8xf32>
    %c2 = arith.constant 2 : index
    %c0_26 = arith.constant 0 : index
    %c0_27 = arith.constant 0 : index
    %36 = vector.load %arg16[%c2, %c0_26, %c0_27] : memref<4x8x8xf32, #tpu.memory_space<vmem>>, vector<1x8x8xf32>
    %37 = vector.shape_cast %36 : vector<1x8x8xf32> to vector<8x8xf32>
    %38 = vector.shape_cast %35 : vector<8x8xf32> to vector<1x8x8xf32>
    tpu.vector_store %arg16[%c2, %c0_26, %c0_27], %38 {strides = array<i32>} : memref<4x8x8xf32, #tpu.memory_space<vmem>>, vector<1x8x8xf32>,
    %39 = vector.extract_strided_slice %4 {offsets = [0, 48], sizes = [8, 8], strides = [1, 1]} : vector<8x96xf32> to vector<8x8xf32>
    %c2_28 = arith.constant 2 : index
    %c0_29 = arith.constant 0 : index
    %c0_30 = arith.constant 0 : index
    %40 = vector.load %arg17[%c2_28, %c0_29, %c0_30] : memref<4x8x8xf32, #tpu.memory_space<vmem>>, vector<1x8x8xf32>
    %41 = vector.shape_cast %40 : vector<1x8x8xf32> to vector<8x8xf32>
    %42 = vector.shape_cast %39 : vector<8x8xf32> to vector<1x8x8xf32>
    tpu.vector_store %arg17[%c2_28, %c0_29, %c0_30], %42 {strides = array<i32>} : memref<4x8x8xf32, #tpu.memory_space<vmem>>, vector<1x8x8xf32>,
    %43 = vector.extract_strided_slice %4 {offsets = [0, 80], sizes = [8, 8], strides = [1, 1]} : vector<8x96xf32> to vector<8x8xf32>
    %c2_31 = arith.constant 2 : index
    %c0_32 = arith.constant 0 : index
    %c0_33 = arith.constant 0 : index
    %44 = vector.load %arg18[%c2_31, %c0_32, %c0_33] : memref<4x8x8xf32, #tpu.memory_space<vmem>>, vector<1x8x8xf32>
    %45 = vector.shape_cast %44 : vector<1x8x8xf32> to vector<8x8xf32>
    %46 = vector.shape_cast %43 : vector<8x8xf32> to vector<1x8x8xf32>
    tpu.vector_store %arg18[%c2_31, %c0_32, %c0_33], %46 {strides = array<i32>} : memref<4x8x8xf32, #tpu.memory_space<vmem>>, vector<1x8x8xf32>,
    %47 = vector.extract_strided_slice %4 {offsets = [0, 24], sizes = [8, 8], strides = [1, 1]} : vector<8x96xf32> to vector<8x8xf32>
    %cst_34 = arith.constant 0.353553385 : f32
    %48 = vector.broadcast %cst_34 : f32 to vector<8x8xf32>
    %49 = arith.mulf %47, %48 : vector<8x8xf32>
    %c3 = arith.constant 3 : index
    %c0_35 = arith.constant 0 : index
    %c0_36 = arith.constant 0 : index
    %50 = vector.load %arg16[%c3, %c0_35, %c0_36] : memref<4x8x8xf32, #tpu.memory_space<vmem>>, vector<1x8x8xf32>
    %51 = vector.shape_cast %50 : vector<1x8x8xf32> to vector<8x8xf32>
    %52 = vector.shape_cast %49 : vector<8x8xf32> to vector<1x8x8xf32>
    tpu.vector_store %arg16[%c3, %c0_35, %c0_36], %52 {strides = array<i32>} : memref<4x8x8xf32, #tpu.memory_space<vmem>>, vector<1x8x8xf32>,
    %53 = vector.extract_strided_slice %4 {offsets = [0, 56], sizes = [8, 8], strides = [1, 1]} : vector<8x96xf32> to vector<8x8xf32>
    %c3_37 = arith.constant 3 : index
    %c0_38 = arith.constant 0 : index
    %c0_39 = arith.constant 0 : index
    %54 = vector.load %arg17[%c3_37, %c0_38, %c0_39] : memref<4x8x8xf32, #tpu.memory_space<vmem>>, vector<1x8x8xf32>
    %55 = vector.shape_cast %54 : vector<1x8x8xf32> to vector<8x8xf32>
    %56 = vector.shape_cast %53 : vector<8x8xf32> to vector<1x8x8xf32>
    tpu.vector_store %arg17[%c3_37, %c0_38, %c0_39], %56 {strides = array<i32>} : memref<4x8x8xf32, #tpu.memory_space<vmem>>, vector<1x8x8xf32>,
    %57 = vector.extract_strided_slice %4 {offsets = [0, 88], sizes = [8, 8], strides = [1, 1]} : vector<8x96xf32> to vector<8x8xf32>
    %c3_40 = arith.constant 3 : index
    %c0_41 = arith.constant 0 : index
    %c0_42 = arith.constant 0 : index
    %58 = vector.load %arg18[%c3_40, %c0_41, %c0_42] : memref<4x8x8xf32, #tpu.memory_space<vmem>>, vector<1x8x8xf32>
    %59 = vector.shape_cast %58 : vector<1x8x8xf32> to vector<8x8xf32>
    %60 = vector.shape_cast %57 : vector<8x8xf32> to vector<1x8x8xf32>
    tpu.vector_store %arg18[%c3_40, %c0_41, %c0_42], %60 {strides = array<i32>} : memref<4x8x8xf32, #tpu.memory_space<vmem>>, vector<1x8x8xf32>,
    %c0_43 = arith.constant 0 : index
    %c0_44 = arith.constant 0 : index
    %c0_45 = arith.constant 0 : index
    %61 = vector.load %arg16[%c0_43, %c0_44, %c0_45] : memref<4x8x8xf32, #tpu.memory_space<vmem>>, vector<4x8x8xf32>
    %c0_46 = arith.constant 0 : index
    %c0_47 = arith.constant 0 : index
    %c0_48 = arith.constant 0 : index
    %62 = vector.load %arg17[%c0_46, %c0_47, %c0_48] : memref<4x8x8xf32, #tpu.memory_space<vmem>>, vector<4x8x8xf32>
    %c0_49 = arith.constant 0 : index
    %c0_50 = arith.constant 0 : index
    %c0_51 = arith.constant 0 : index
    %63 = vector.load %arg18[%c0_49, %c0_50, %c0_51] : memref<4x8x8xf32, #tpu.memory_space<vmem>>, vector<4x8x8xf32>
    "tpu.trace_start"() <{level = 10 : i32, message = "hqd,hkd->hqk"}> : () -> ()
    %cst_52 = arith.constant dense<0.000000e+00> : vector<4x8x8xf32>
    %64 = tpu.matmul %61, %62, %cst_52 {dimension_numbers = #tpu.dot_dimension_numbers<[2], [2], [1], [1], [0, 0, 0, 1, 1, 1], [0], [0]>} : vector<4x8x8xf32>, vector<4x8x8xf32>, vector<4x8x8xf32> -> vector<4x8x8xf32>
    "tpu.trace_stop"() : () -> ()
    %65 = vector.shape_cast %2 : vector<8x8xf32> to vector<1x8x8xf32>
    %66 = vector.broadcast %65 : vector<1x8x8xf32> to vector<4x8x8xf32>
    %67 = arith.addf %64, %66 : vector<4x8x8xf32>
    %cst_53 = arith.constant dense<0xFF800000> : vector<4x8xf32>
    %68 = vector.multi_reduction <maximumf>, %67, %cst_53 [2] : vector<4x8x8xf32> to vector<4x8xf32>
    %69 = vector.shape_cast %68 : vector<4x8xf32> to vector<4x8x1xf32>
    %70 = vector.broadcast %69 : vector<4x8x1xf32> to vector<4x8x8xf32>
    %71 = arith.subf %67, %70 : vector<4x8x8xf32>
    %72 = math.exp %71 : vector<4x8x8xf32>
    %cst_54 = arith.constant dense<0.000000e+00> : vector<4x8xf32>
    %73 = vector.multi_reduction <add>, %72, %cst_54 [2] : vector<4x8x8xf32> to vector<4x8xf32>
    %74 = vector.shape_cast %73 : vector<4x8xf32> to vector<4x8x1xf32>
    %75 = tpu.reciprocal %74 {approx = true} : vector<4x8x1xf32> -> vector<4x8x1xf32>
    %76 = vector.broadcast %75 : vector<4x8x1xf32> to vector<4x8x8xf32>
    %77 = arith.mulf %72, %76 : vector<4x8x8xf32>
    %c0_55 = arith.constant 0 : index
    %c0_56 = arith.constant 0 : index
    %c0_57 = arith.constant 0 : index
    %c0_58 = arith.constant 0 : index
    %78 = vector.load %arg15[%c0_55, %c0_56, %c0_57, %c0_58] : memref<1x4x8x8xf32, #tpu.memory_space<vmem>>, vector<1x4x8x8xf32>
    %79 = vector.shape_cast %78 : vector<1x4x8x8xf32> to vector<4x8x8xf32>
    %80 = vector.shape_cast %77 : vector<4x8x8xf32> to vector<1x4x8x8xf32>
    tpu.vector_store %arg15[%c0_55, %c0_56, %c0_57, %c0_58], %80 {strides = array<i32>} : memref<1x4x8x8xf32, #tpu.memory_space<vmem>>, vector<1x4x8x8xf32>,
    "tpu.trace_start"() <{level = 10 : i32, message = "hqk,hkd->hqd"}> : () -> ()
    %cst_59 = arith.constant dense<0.000000e+00> : vector<4x8x8xf32>
    %81 = tpu.matmul %77, %63, %cst_59 {dimension_numbers = #tpu.dot_dimension_numbers<[2], [1], [1], [2], [0, 0, 0, 1, 1, 2], [0], [0]>} : vector<4x8x8xf32>, vector<4x8x8xf32>, vector<4x8x8xf32> -> vector<4x8x8xf32>
    "tpu.trace_stop"() : () -> ()
    %c0_60 = arith.constant 0 : index
    %c0_61 = arith.constant 0 : index
    %c0_62 = arith.constant 0 : index
    %82 = vector.load %arg4[%c0_60, %c0_61, %c0_62] : memref<4x8x32xf32, #tpu.memory_space<vmem>>, vector<4x8x32xf32>
    "tpu.trace_start"() <{level = 10 : i32, message = "hsd,hdo->hso"}> : () -> ()
    %cst_63 = arith.constant dense<0.000000e+00> : vector<4x8x32xf32>
    %83 = tpu.matmul %81, %82, %cst_63 {dimension_numbers = #tpu.dot_dimension_numbers<[2], [1], [1], [2], [0, 0, 0, 1, 1, 2], [0], [0]>} : vector<4x8x8xf32>, vector<4x8x32xf32>, vector<4x8x32xf32> -> vector<4x8x32xf32>
    "tpu.trace_stop"() : () -> ()
    %cst_64 = arith.constant dense<0.000000e+00> : vector<8x32xf32>
    %84 = vector.multi_reduction <add>, %83, %cst_64 [0] : vector<4x8x32xf32> to vector<8x32xf32>
    %c0_65 = arith.constant 0 : index
    %c0_66 = arith.constant 0 : index
    %85 = vector.load %arg5[%c0_65, %c0_66] : memref<1x32xf32, #tpu.memory_space<vmem>>, vector<1x32xf32>
    %86 = vector.broadcast %85 : vector<1x32xf32> to vector<8x32xf32>
    %87 = arith.addf %84, %86 : vector<8x32xf32>
    %88 = arith.addf %1, %87 : vector<8x32xf32>
    %c0_67 = arith.constant 0 : index
    %c0_68 = arith.constant 0 : index
    %89 = vector.load %arg6[%c0_67, %c0_68] : memref<1x32xf32, #tpu.memory_space<vmem>>, vector<1x32xf32>
    %c0_69 = arith.constant 0 : index
    %c0_70 = arith.constant 0 : index
    %90 = vector.load %arg7[%c0_69, %c0_70] : memref<1x32xf32, #tpu.memory_space<vmem>>, vector<1x32xf32>
    %cst_71 = arith.constant dense<0.000000e+00> : vector<8xf32>
    %91 = vector.multi_reduction <add>, %88, %cst_71 [1] : vector<8x32xf32> to vector<8xf32>
    %92 = vector.shape_cast %91 : vector<8xf32> to vector<8x1xf32>
    %cst_72 = arith.constant 3.200000e+01 : f32
    %93 = vector.broadcast %cst_72 : f32 to vector<8x1xf32>
    %94 = arith.divf %92, %93 : vector<8x1xf32>
    %95 = vector.broadcast %94 : vector<8x1xf32> to vector<8x32xf32>
    %96 = arith.subf %88, %95 : vector<8x32xf32>
    %97 = arith.mulf %96, %96 : vector<8x32xf32>
    %cst_73 = arith.constant dense<0.000000e+00> : vector<8xf32>
    %98 = vector.multi_reduction <add>, %97, %cst_73 [1] : vector<8x32xf32> to vector<8xf32>
    %99 = vector.shape_cast %98 : vector<8xf32> to vector<8x1xf32>
    %cst_74 = arith.constant 3.200000e+01 : f32
    %100 = vector.broadcast %cst_74 : f32 to vector<8x1xf32>
    %101 = arith.divf %99, %100 : vector<8x1xf32>
    %102 = vector.broadcast %94 : vector<8x1xf32> to vector<8x32xf32>
    %103 = arith.subf %88, %102 : vector<8x32xf32>
    %cst_75 = arith.constant 9.99999974E-6 : f32
    %104 = vector.broadcast %cst_75 : f32 to vector<8x1xf32>
    %105 = arith.addf %101, %104 : vector<8x1xf32>
    %106 = math.rsqrt %105 : vector<8x1xf32>
    %107 = vector.broadcast %106 : vector<8x1xf32> to vector<8x32xf32>
    %108 = arith.mulf %103, %107 : vector<8x32xf32>
    %109 = vector.broadcast %89 : vector<1x32xf32> to vector<8x32xf32>
    %110 = arith.mulf %108, %109 : vector<8x32xf32>
    %111 = vector.broadcast %90 : vector<1x32xf32> to vector<8x32xf32>
    %112 = arith.addf %110, %111 : vector<8x32xf32>
    %c0_76 = arith.constant 0 : index
    %c0_77 = arith.constant 0 : index
    %113 = vector.load %arg8[%c0_76, %c0_77] : memref<32x64xf32, #tpu.memory_space<vmem>>, vector<32x64xf32>
    %cst_78 = arith.constant dense<0.000000e+00> : vector<8x64xf32>
    %114 = tpu.matmul %112, %113, %cst_78 {dimension_numbers = #tpu.dot_dimension_numbers<[1], [0], [0], [1], [0, 0, 1, 1], [], []>} : vector<8x32xf32>, vector<32x64xf32>, vector<8x64xf32> -> vector<8x64xf32>
    %c0_79 = arith.constant 0 : index
    %c0_80 = arith.constant 0 : index
    %115 = vector.load %arg9[%c0_79, %c0_80] : memref<1x64xf32, #tpu.memory_space<vmem>>, vector<1x64xf32>
    %116 = vector.broadcast %115 : vector<1x64xf32> to vector<8x64xf32>
    %117 = arith.addf %114, %116 : vector<8x64xf32>
    %cst_81 = arith.constant 5.000000e-01 : f32
    %118 = vector.broadcast %cst_81 : f32 to vector<8x64xf32>
    %119 = arith.mulf %118, %117 : vector<8x64xf32>
    %cst_82 = arith.constant 0.707106769 : f32
    %120 = vector.broadcast %cst_82 : f32 to vector<8x64xf32>
    %121 = arith.mulf %117, %120 : vector<8x64xf32>
    %122 = math.erf %121 : vector<8x64xf32>
    %cst_83 = arith.constant 1.000000e+00 : f32
    %123 = vector.broadcast %cst_83 : f32 to vector<8x64xf32>
    %124 = arith.addf %123, %122 : vector<8x64xf32>
    %125 = arith.mulf %119, %124 : vector<8x64xf32>
    %c0_84 = arith.constant 0 : index
    %c0_85 = arith.constant 0 : index
    %126 = vector.load %arg10[%c0_84, %c0_85] : memref<64x32xf32, #tpu.memory_space<vmem>>, vector<64x32xf32>
    %cst_86 = arith.constant dense<0.000000e+00> : vector<8x32xf32>
    %127 = tpu.matmul %125, %126, %cst_86 {dimension_numbers = #tpu.dot_dimension_numbers<[1], [0], [0], [1], [0, 0, 1, 1], [], []>} : vector<8x64xf32>, vector<64x32xf32>, vector<8x32xf32> -> vector<8x32xf32>
    %c0_87 = arith.constant 0 : index
    %c0_88 = arith.constant 0 : index
    %128 = vector.load %arg11[%c0_87, %c0_88] : memref<1x32xf32, #tpu.memory_space<vmem>>, vector<1x32xf32>
    %129 = vector.broadcast %128 : vector<1x32xf32> to vector<8x32xf32>
    %130 = arith.addf %127, %129 : vector<8x32xf32>
    %131 = arith.addf %112, %130 : vector<8x32xf32>
    %c0_89 = arith.constant 0 : index
    %c0_90 = arith.constant 0 : index
    %132 = vector.load %arg12[%c0_89, %c0_90] : memref<1x32xf32, #tpu.memory_space<vmem>>, vector<1x32xf32>
    %c0_91 = arith.constant 0 : index
    %c0_92 = arith.constant 0 : index
    %133 = vector.load %arg13[%c0_91, %c0_92] : memref<1x32xf32, #tpu.memory_space<vmem>>, vector<1x32xf32>
    %cst_93 = arith.constant dense<0.000000e+00> : vector<8xf32>
    %134 = vector.multi_reduction <add>, %131, %cst_93 [1] : vector<8x32xf32> to vector<8xf32>
    %135 = vector.shape_cast %134 : vector<8xf32> to vector<8x1xf32>
    %cst_94 = arith.constant 3.200000e+01 : f32
    %136 = vector.broadcast %cst_94 : f32 to vector<8x1xf32>
    %137 = arith.divf %135, %136 : vector<8x1xf32>
    %138 = vector.broadcast %137 : vector<8x1xf32> to vector<8x32xf32>
    %139 = arith.subf %131, %138 : vector<8x32xf32>
    %140 = arith.mulf %139, %139 : vector<8x32xf32>
    %cst_95 = arith.constant dense<0.000000e+00> : vector<8xf32>
    %141 = vector.multi_reduction <add>, %140, %cst_95 [1] : vector<8x32xf32> to vector<8xf32>
    %142 = vector.shape_cast %141 : vector<8xf32> to vector<8x1xf32>
    %cst_96 = arith.constant 3.200000e+01 : f32
    %143 = vector.broadcast %cst_96 : f32 to vector<8x1xf32>
    %144 = arith.divf %142, %143 : vector<8x1xf32>
    %145 = vector.broadcast %137 : vector<8x1xf32> to vector<8x32xf32>
    %146 = arith.subf %131, %145 : vector<8x32xf32>
    %cst_97 = arith.constant 9.99999974E-6 : f32
    %147 = vector.broadcast %cst_97 : f32 to vector<8x1xf32>
    %148 = arith.addf %144, %147 : vector<8x1xf32>
    %149 = math.rsqrt %148 : vector<8x1xf32>
    %150 = vector.broadcast %149 : vector<8x1xf32> to vector<8x32xf32>
    %151 = arith.mulf %146, %150 : vector<8x32xf32>
    %152 = vector.broadcast %132 : vector<1x32xf32> to vector<8x32xf32>
    %153 = arith.mulf %151, %152 : vector<8x32xf32>
    %154 = vector.broadcast %133 : vector<1x32xf32> to vector<8x32xf32>
    %155 = arith.addf %153, %154 : vector<8x32xf32>
    %c0_98 = arith.constant 0 : index
    %c0_99 = arith.constant 0 : index
    %c0_100 = arith.constant 0 : index
    %156 = vector.load %arg14[%c0_98, %c0_99, %c0_100] : memref<1x8x32xf32, #tpu.memory_space<vmem>>, vector<1x8x32xf32>
    %157 = vector.shape_cast %156 : vector<1x8x32xf32> to vector<8x32xf32>
    %158 = vector.shape_cast %155 : vector<8x32xf32> to vector<1x8x32xf32>
    tpu.vector_store %arg14[%c0_98, %c0_99, %c0_100], %158 {strides = array<i32>} : memref<1x8x32xf32, #tpu.memory_space<vmem>>, vector<1x8x32xf32>,
    return
  }
  func.func @transform_0(%arg0: i32) -> (i32, i32, i32) {
    %c0_i32 = arith.constant 0 : i32
    %c0_i32_0 = arith.constant 0 : i32
    %c0_i32_1 = arith.constant 0 : i32
    return %arg0, %c0_i32, %c0_i32_0 : i32, i32, i32
  }
  func.func @transform_1(%arg0: i32) -> (i32, i32) {
    %c0_i32 = arith.constant 0 : i32
    %c0_i32_0 = arith.constant 0 : i32
    %c0_i32_1 = arith.constant 0 : i32
    return %c0_i32, %c0_i32_0 : i32, i32
  }
  func.func @transform_2(%arg0: i32) -> (i32, i32) {
    %c0_i32 = arith.constant 0 : i32
    %c0_i32_0 = arith.constant 0 : i32
    %c0_i32_1 = arith.constant 0 : i32
    return %c0_i32, %c0_i32_0 : i32, i32
  }
  func.func @transform_3(%arg0: i32) -> (i32, i32, i32) {
    %c0_i32 = arith.constant 0 : i32
    %c0_i32_0 = arith.constant 0 : i32
    %c0_i32_1 = arith.constant 0 : i32
    %c0_i32_2 = arith.constant 0 : i32
    return %c0_i32, %c0_i32_0, %c0_i32_1 : i32, i32, i32
  }
  func.func @transform_4(%arg0: i32) -> (i32, i32) {
    %c0_i32 = arith.constant 0 : i32
    %c0_i32_0 = arith.constant 0 : i32
    %c0_i32_1 = arith.constant 0 : i32
    return %c0_i32, %c0_i32_0 : i32, i32
  }
  func.func @transform_5(%arg0: i32) -> (i32, i32) {
    %c0_i32 = arith.constant 0 : i32
    %c0_i32_0 = arith.constant 0 : i32
    %c0_i32_1 = arith.constant 0 : i32
    return %c0_i32, %c0_i32_0 : i32, i32
  }
  func.func @transform_6(%arg0: i32) -> (i32, i32) {
    %c0_i32 = arith.constant 0 : i32
    %c0_i32_0 = arith.constant 0 : i32
    %c0_i32_1 = arith.constant 0 : i32
    return %c0_i32, %c0_i32_0 : i32, i32
  }
  func.func @transform_7(%arg0: i32) -> (i32, i32) {
    %c0_i32 = arith.constant 0 : i32
    %c0_i32_0 = arith.constant 0 : i32
    %c0_i32_1 = arith.constant 0 : i32
    return %c0_i32, %c0_i32_0 : i32, i32
  }
  func.func @transform_8(%arg0: i32) -> (i32, i32) {
    %c0_i32 = arith.constant 0 : i32
    %c0_i32_0 = arith.constant 0 : i32
    %c0_i32_1 = arith.constant 0 : i32
    return %c0_i32, %c0_i32_0 : i32, i32
  }
  func.func @transform_9(%arg0: i32) -> (i32, i32) {
    %c0_i32 = arith.constant 0 : i32
    %c0_i32_0 = arith.constant 0 : i32
    %c0_i32_1 = arith.constant 0 : i32
    return %c0_i32, %c0_i32_0 : i32, i32
  }
  func.func @transform_10(%arg0: i32) -> (i32, i32) {
    %c0_i32 = arith.constant 0 : i32
    %c0_i32_0 = arith.constant 0 : i32
    %c0_i32_1 = arith.constant 0 : i32
    return %c0_i32, %c0_i32_0 : i32, i32
  }
  func.func @transform_11(%arg0: i32) -> (i32, i32) {
    %c0_i32 = arith.constant 0 : i32
    %c0_i32_0 = arith.constant 0 : i32
    %c0_i32_1 = arith.constant 0 : i32
    return %c0_i32, %c0_i32_0 : i32, i32
  }
  func.func @transform_12(%arg0: i32) -> (i32, i32) {
    %c0_i32 = arith.constant 0 : i32
    %c0_i32_0 = arith.constant 0 : i32
    %c0_i32_1 = arith.constant 0 : i32
    return %c0_i32, %c0_i32_0 : i32, i32
  }
  func.func @transform_13(%arg0: i32) -> (i32, i32, i32) {
    %c0_i32 = arith.constant 0 : i32
    %c0_i32_0 = arith.constant 0 : i32
    %c0_i32_1 = arith.constant 0 : i32
    return %arg0, %c0_i32, %c0_i32_0 : i32, i32, i32
  }
  func.func @transform_14(%arg0: i32) -> (i32, i32, i32, i32) {
    %c0_i32 = arith.constant 0 : i32
    %c0_i32_0 = arith.constant 0 : i32
    %c0_i32_1 = arith.constant 0 : i32
    %c0_i32_2 = arith.constant 0 : i32
    return %arg0, %c0_i32, %c0_i32_0, %c0_i32_1 : i32, i32, i32, i32
  }
}

</mosaic_0001>

<bundles_post_ra>
// kernel: tpu_custom_call.1
= control target key start
LH: loop header
LB: loop body
LE: loop exit
PB: predicated region body
PF: predicated region fallthrough
CT: control target
= control target key end

     0   :  { %s2949_s0 = inlined_call_operand.hbm [shape: f32[2,8,32], index: 0, kind: input, shape index: {}]   ;;  %s2950_s1 = inlined_call_operand.hbm [shape: f32[8,8], index: 1, kind: input, shape index: {}]   ;;  %s2951_s2 = inlined_call_operand.vmem [shape: f32[32,96], index: 2, kind: input, shape index: {}]   ;;  %s2952_s3 = inlined_call_operand.vmem [shape: f32[4,8,32], index: 3, kind: input, shape index: {}]   ;;  %s2953_s4 = inlined_call_operand.vmem [shape: f32[1,32], index: 4, kind: input, shape index: {}]   ;;  %s2954_s5 = inlined_call_operand.vmem [shape: f32[1,32], index: 5, kind: input, shape index: {}]   ;;  %s2955_s6 = inlined_call_operand.vmem [shape: f32[1,32], index: 6, kind: input, shape index: {}]   ;;  %s2956_s7 = inlined_call_operand.vmem [shape: f32[32,64], index: 7, kind: input, shape index: {}]   ;;  %s2957_s8 = inlined_call_operand.vmem [shape: f32[1,64], index: 8, kind: input, shape index: {}]   ;;  %s2958_s9 = inlined_call_operand.vmem [shape: f32[64,32], index: 9, kind: input, shape index: {}]   ;;  %s2959_s10 = inlined_call_operand.vmem [shape: f32[1,32], index: 10, kind: input, shape index: {}]   ;;  %s2960_s11 = inlined_call_operand.vmem [shape: f32[1,32], index: 11, kind: input, shape index: {}]   ;;  %s2961_s12 = inlined_call_operand.vmem [shape: f32[1,32], index: 12, kind: input, shape index: {}]   ;;  %s2962_s13 = inlined_call_operand.hbm [shape: f32[2,8,32], index: 13, kind: output, shape index: {0}]   ;;  %s2963_s14 = inlined_call_operand.hbm [shape: f32[2,4,8,8], index: 14, kind: output, shape index: {1}]  }
   0x1   :  { %2975 = sst [smem:[#allocation23_spill]] %s2950_s1 }
   0x2   :  { %2976 = sst [smem:[#allocation24_spill]] %s2961_s12 }
   0x3   :  { %2977 = sst [smem:[#allocation25_spill]] %s2962_s13 }
   0x4   :  { %20 = vsyncpa [#allocation6], 0 }
   0x5   :  { %22 = vsyncpa [#allocation6 + $0x1], 0 }
   0x6   :  { %23 = vsyncpa [#allocation9], 0 }
   0x7   :  { %24 = vsyncpa [#allocation7], 0 }
   0x8   :  { %26 = vsyncpa [#allocation7 + $0x1], 0 }
   0x9   :  { %27 = vsyncpa [#allocation12], 0 }
   0xa   :  { %29 = vsyncpa [#allocation12 + $0x1], 0  ;;  %s2535_s29 = smov 0   ;;  %s2537_s30 = smov 0  }
   0xb   :  { %s2539_s15 = smov 0   ;;  %s2541_s16 = smov 0  }
   0xc LB: > { %2978 = sst [smem:[#allocation17_spill]] %s2427_s29  ;;  %s2556_s17 = sadd.s32 4294967295, %s2439_s16   ;;  %s2439_s16 = sphi %s2541_s16, %s3005_s16   ;;  %s2435_s15 = sphi %s2539_s15, %s3007_s15   ;;  %s2431_s30 = sphi %s2537_s30, %s3009_s30   ;;  %s2427_s29 = sphi %s2535_s29, %s3008_s29  }
   0xd   : > { %2979 = sst [smem:[#allocation18_spill]] %s2435_s15  ;;  %s1999_s18 = sadd.s32 4294967294, %s2439_s16  }
   0xe   : > { %2980 = sst [smem:[#allocation19_spill]] %s2439_s16  ;;  %p55_p0 = scmp.ne.s32.totalorder %s2431_s30, %s2427_s29 }
   0xf   : > { %p2964_p1 = scmp.eq.s32.totalorder %s2556_s17, 0  ;;  %p337_p3 = scmp.eq.s32.totalorder %s1999_s18, 1 }
  0x10   : > { %p2000_p5 = scmp.ge.s32.totalorder %s2439_s16, 1  ;;  %p370_p7 = scmp.lt.s32.totalorder %s2439_s16, 3 }
  0x11   : > { %p2565_p4 = por %p2964_p1, %p55_p0  ;;  %p2570_p6 = por %p337_p3, %p55_p0 }
  0x12   : > { %p2575_p8 = pnand %p2000_p5, %p370_p7  ;;  %s2441_s22 = smov [#allocation8]  }
  0x13   : > { %s2981_s19 = scalar_select %p2565_p4, 1, 0 }
  0x14   : > { %s2982_s20 = scalar_select %p2570_p6, 1, 0 }
  0x15   : > { %s2984_s21 = scalar_select %p2575_p8, 1, 0 }
  0x16   : > { %2983 = sst [smem:[#allocation20_spill]] %s2982_s20  ;;  %s383_s23 = sshll.u32 %s2441_s22, 4  ;;  %s384_s23 = int_to_ptr.vmem [resolvable:$true] %s383_s23 }
  0x17   : > { %p2198_p10 = pneg %p2575_p8  ;;  %s2583_s24 = sadd.s32 1, %s2439_s16  }
  0x18   : > { %2985 = sst [smem:[#allocation21_spill]] %s2583_s24  ;;  %s39_s26 = ssub.s32 %s2439_s16, %s2583_s24 }
  0x19   : > { %p2587_p11 = pnand %p2198_p10, %p2964_p1  ;;  %p2593_p12 = scmp.eq.s32.totalorder %s39_s26, 0 }
  0x1a   : > { %s42_s28 = sadd.s32 1, %s2435_s15  ;;  %p49_p13 = scmp.ne.s32.totalorder %s2435_s15, %s2431_s30 }
  0x1b   : > { %p2289_p0 = pneg %p2587_p11  ;;  %s2298_s18 = scalar_lea.vmem %s384_s23, 128 }
  0x1c   : > { %p2299_p3 = scmp.ne.s32.totalorder %s384_s23, %s2298_s18  ;;  %p2306_p9 = scmp.lt.s32.totalorder %s384_s23, %s384_s23 }
  0x1d   : > { %p2307_p2 = scmp.lt.s32.totalorder %s2298_s18, %s2298_s18 }
  0x1e   : > { %p2301_p5 = pnand %p2299_p3, %p2289_p0 }
  0x1f   : > { %p2308_p10 = por %p2307_p2, %p2306_p9 }
  0x20   : > { %p2302_p7 = pneg %p2301_p5 }
  0x22   : > { %p2309_p1 = pnand %p2308_p10, %p2302_p7 }
  0x24   : > { %2312 = shalt.err (!%p2309_p1)
}
  0x25   : > { %s2988_s1 = sld [smem:[#allocation23_spill]]  ;;  %p50_p1 = scmp.eq.s32.totalorder %s2439_s16, 0 }
  0x26   : > { %s2610_s18 = scalar_select %p2593_p12, %s2435_s15, %s42_s28  }
  0x27   : > { %p2990_p2 = scmp.eq.s32.totalorder %s2556_s17, 1  ;;  %p2214_p0 = scmp.lt.s32.totalorder %s2439_s16, 2 }
  0x28   : > { %2989 = sst [smem:[#allocation22_spill]] %s2610_s18  ;;  %s427_s22 = sand.u32 1, %s2435_s15  }
  0x29   : > { %p2618_p9 = por %p2990_p2, %p49_p13  ;;  %p51_p3 = por %p50_p1, %p49_p13 }
  0x2a   : > { %s2003_s26 = sshll.u32 %s427_s22, 3  ;;  %s2004_s24 = sshll.u32 %s2439_s16, 7 }
  0x2b   : > { %2201 = dma.hbm_to_vmem [thread:$0]  (!%p2587_p11), %s2988_s1, 128, %s384_s23, [#allocation9]  }
  0x2c   : > { %s2991_s25 = scalar_select %p2618_p9, 1, 0 }
  0x2d   : > { %s2631_s23 = scalar_lea.hbm %s2949_s0, %s2004_s24  ;;  %s431_s27 = scalar_lea.vmem [#allocation5], %s2003_s26 }
  0x2e   : > { %s438_s28 = sshll.u32 %s431_s27, 4  ;;  %p2633_p11 = pnand %p2214_p0, %p51_p3  ;;  %s439_s28 = int_to_ptr.vmem [resolvable:$true] %s438_s28 }
  0x2f   : > { %s428_s18 = scalar_lea.sflag [#allocation6], %s427_s22  ;;  %s2313_s15 = scalar_lea.hbm %s2631_s23, 128 }
  0x30   : > { %p2314_p12 = scmp.ne.s32.totalorder %s2631_s23, %s2313_s15  ;;  %p2315_p13 = pneg %p2633_p11 }
  0x31   : > { %s2318_s24 = scalar_lea.hbm %s2949_s0, 256  ;;  %p2319_p10 = scmp.lt.s32.totalorder %s2631_s23, %s2949_s0 }
  0x32   : > { %p2316_p5 = pnand %p2315_p13, %p2314_p12  ;;  %p2320_p1 = scmp.lt.s32.totalorder %s2318_s24, %s2313_s15 }
  0x34   : > { %p2317_p7 = pneg %p2316_p5  ;;  %p2321_p2 = por %p2320_p1, %p2319_p10 }
  0x36   : > { %p2322_p0 = pnand %p2321_p2, %p2317_p7 }
  0x38   : > { %2325 = shalt.err (!%p2322_p0)
}
  0x39   : > { %s2326_s27 = scalar_lea.vmem %s439_s28, 128  ;;  %s2442_s22 = smov [#allocation5]  }
  0x3a   : > { %p2327_p3 = scmp.ne.s32.totalorder %s439_s28, %s2326_s27  ;;  %s2331_s13 = sshll.u32 %s2442_s22, 4  ;;  %s2332_s13 = int_to_ptr.vmem [resolvable:$false] %s2331_s13 }
  0x3b   : > { %s2333_s12 = scalar_lea.vmem %s2332_s13, 256  ;;  %p2334_p12 = scmp.lt.s32.totalorder %s439_s28, %s2332_s13 }
  0x3c   : > { %p2329_p6 = pnand %p2327_p3, %p2315_p13  ;;  %p2335_p5 = scmp.lt.s32.totalorder %s2333_s12, %s2326_s27 }
  0x3e   : > { %p2330_p9 = pneg %p2329_p6  ;;  %p2336_p4 = por %p2335_p5, %p2334_p12 }
  0x40   : > { %p2337_p8 = pnand %p2336_p4, %p2330_p9 }
  0x42   : > { %2340 = shalt.err (!%p2337_p8)
}
  0x43   : > { %2205 = dma.hbm_to_vmem [thread:$0]  (!%p2633_p11), %s2631_s23, 128, %s439_s28, %s428_s18  }
  0x44   : > { %p2993_p7 = scmp.ne.s32.totalorder %s2984_s21, 0 }
  0x45   : > { %s2654_s15 = sand.u32 (!%p2993_p7), 1, %s2431_s30   ;;  %p2994_p4 = scmp.ne.s32.totalorder (!%p2993_p7), %s2981_s19, 0 }
  0x46   : > { %447 = sbr.rel (%p2993_p7) target bundleno = 2359 (0x937), region = 72  ;;  %s2006_s16 = sshll.u32 (!%p2993_p7), %s2654_s15, 3 }
  0x47   : > { %s450_s13 = scalar_lea.sflag (!%p2993_p7), [#allocation6], %s2654_s15  ;;  %s453_s12 = scalar_lea.vmem (!%p2993_p7), [#allocation5], %s2006_s16 }
  0x4b   : > { %2410 = dma.done.wait (%p2994_p4), %s450_s13, 128  }
  0x4c   : > { %2412 = vsyncadd (%p2994_p4), %s450_s13, 4294967168  ;;  %p2995_p6 = scmp.eq.s32.totalorder %s2556_s17, 0 }
  0x4e   : > { %2414 = dma.done.wait (%p2995_p6), [#allocation9], 128   ;;  %p2996_p8 = pmov %p2995_p6 }
  0x4f   : > { %v2443_v0 = vmov 0.0   ;;  %vm2444_vm0 = vmmov 0   ;;  %v512_v1 = vld [vmem:[%s2951_s2 + $0x18] sm:$0xff]  ;;  %v511_v2 = vld [vmem:[%s2951_s2 + $0x10] sm:$0xff]  ;;  %v510_v3 = vld [vmem:[%s2951_s2 + $0x8] sm:$0xff]  ;;  %vm513_vm1 = vcmask 261120  }
  0x50   : > { %2416 = vsyncadd (%p2996_p8), [#allocation9], 4294967168  ;;  %2087 = vmatprep.subr.mxu0 %v2443_v0  ;;  %2095 = vmatprep.mubr.msk.f32.mxu0 %vm2444_vm0, %v2443_v0  ;;  %v509_v4 = vld [vmem:[%s2951_s2] sm:$0xff]  ;;  %vm588_vm2 = vcmask 64512   ;;  %s2445_s24 = smov 80   ;;  %s2446_s26 = smov 96  }
  0x51   : > { %2103 = vmatprep.subr.mxu1 %v2443_v0  ;;  %2105 = vmatprep.mubr.msk.f32.mxu1 %vm2444_vm0, %v2443_v0  ;;  %v2688_v5 = vld [vmem:[%s453_s12] sm:$0xff]  ;;  %s2447_s27 = smov 88   ;;  %s2448_s22 = smov 120   ;;  %v508_v24 = vld [vmem:[#allocation8] sm:$0xff]  ;;  %vm1747_vm3 = vcmask 523264  }
  0x52   : > { %2088 = vmatpush3.msra.mxu0 %v512_v1  ;;  %s2449_s13 = smov 72   ;;  %s2450_s12 = smov 112  }
  0x53   : > { %2089 = vmatprep.subr.mxu0 %v2443_v0  ;;  %s2451_s1 = smov 104   ;;  %s2452_s19 = smov 56  }
  0x54   : > { %2090 = vmatpush3.msra.mxu0 %v511_v2  ;;  %s2453_s21 = smov 64   ;;  %s2454_s18 = smov 48  }
  0x55   : > { %2091 = vmatprep.subr.mxu0 %v2443_v0  ;;  %s2455_s23 = smov 40   ;;  %s2009_s28 = sshll.u32 %s2654_s15, 5 }
  0x56   : > { %2092 = vmatpush3.msra.mxu0 %v510_v3  ;;  %s2750_s29 = scalar_lea.vmem [#allocation11], %s2009_s28  ;;  %p2997_p11 = scmp.ne.s32.totalorder %s2991_s25, 0 }
  0x57   : > { %2093 = vmatprep.subr.mxu0 %v2443_v0 }
  0x58   : > { %2094 = vmatpush3.msra.mxu0 %v509_v4 }
  0x59   : > { %2096 = vmatmul.mubr.msk.f32.vlgmr.msra.gmra.mxu0 %vm513_vm1, %v2688_v5  ;;  %2098 = vmatprep.subr.mxu0 %v2443_v0 }
  0x5a   : > { %2100 = vmatprep.mubr.msk.f32.mxu0 %vm2444_vm0, %v2443_v0 }
 0x119   : > { %v2696_v6 = vpop.f32.mrf.mxu0 }
 0x11a   : > { %620 = vrot.lane.b32.xlu1 %v2696_v6, %s2445_s24  ;;  %591 = vrot.lane.b32.xlu0 %v2696_v6, %s2446_s26  ;;  %v587_v7 = vmul.f32 0.35355338, %v2696_v6 }
 0x11b   : > { %v2097_v8 = vpop.f32.mrf.mxu0 }
 0x11c   : > { %589 = vst.msk [vmem:[#allocation2] sm:$0xff] %vm588_vm2, %v587_v7 }
 0x11e   : > { %605 = vrot.lane.b32.xlu0 %v2696_v6, %s2447_s27  ;;  %600 = vrot.lane.b32.xlu1 %v587_v7, %s2448_s22  ;;  %s2043_s27 = sshll.u32 %s2556_s17, 9  ;;  %s1884_s22 = sshll.u32 %s2750_s29, 4  ;;  %s2880_s22 = int_to_ptr.vmem [resolvable:$true] %s1884_s22 }
 0x122   : > { %635 = vrot.lane.b32.xlu0 %v2696_v6, %s2449_s13  ;;  %615 = vrot.lane.b32.xlu1 %v587_v7, %s2450_s12 }
 0x123   : > { %v645_v16 = vld [vmem:[#allocation2] sm:$0xff] }
 0x126   : > { %630 = vrot.lane.b32.xlu0 %v587_v7, %s2451_s1  ;;  %s2878_s1 = scalar_lea.hbm %s2963_s14, %s2043_s27 }
 0x18c   : > { %v621_v9 = vpop.permute.xlu1 %620  ;;  %v592_v10 = vpop.permute.xlu0 %591 }
 0x18d   : > { %624 = vst.msk [vmem:[#allocation3 + $0x10] sm:$0xff] %vm588_vm2, %v621_v9  ;;  %594 = vst.msk [vmem:[#allocation3] sm:$0xff] %vm588_vm2, %v592_v10 }
 0x190   : > { %v606_v11 = vpop.permute.xlu0 %605  ;;  %v601_v12 = vpop.permute.xlu1 %600 }
 0x191   : > { %609 = vst.msk [vmem:[#allocation3 + $0x8] sm:$0xff] %vm588_vm2, %v606_v11  ;;  %604 = vst.msk [vmem:[#allocation2 + $0x8] sm:$0xff] %vm588_vm2, %v601_v12 }
 0x194   : > { %v636_v13 = vpop.permute.xlu0 %635  ;;  %v616_v14 = vpop.permute.xlu1 %615  ;;  %v649_v15 = vld [vmem:[#allocation3] sm:$0xff]  ;;  %v651_v19 = vld [vmem:[#allocation3 + $0x10] sm:$0xff] }
 0x195   : > { %639 = vst.msk [vmem:[#allocation3 + $0x18] sm:$0xff] %vm588_vm2, %v636_v13  ;;  %619 = vst.msk [vmem:[#allocation2 + $0x10] sm:$0xff] %vm588_vm2, %v616_v14  ;;  %2099 = vmatpush3.xpose.msk.msra.mxu0 %vm588_vm2, %v649_v15 }
 0x196   : > { %2108 = vmatprep.subr.mxu0 %v2443_v0 }
 0x198   : > { %v631_v17 = vpop.permute.xlu0 %630  ;;  %2101 = vmatmul.mubr.msk.f32.vlgmr.msra.gmra.mxu0 %vm588_vm2, %v645_v16  ;;  %v650_v18 = vld [vmem:[#allocation3 + $0x8] sm:$0xff] }
 0x199   : > { %634 = vst.msk [vmem:[#allocation2 + $0x18] sm:$0xff] %vm588_vm2, %v631_v17  ;;  %2104 = vmatpush3.xpose.msk.msra.mxu1 %vm588_vm2, %v650_v18  ;;  %2109 = vmatpush3.xpose.msk.msra.mxu0 %vm588_vm2, %v651_v19  ;;  %v646_v20 = vld [vmem:[#allocation2 + $0x8] sm:$0xff]  ;;  %v1301_v19 = vld [vmem:[%s2952_s3] sm:$0xff] }
 0x19a   : > { %2110 = vmatprep.mubr.msk.f32.mxu0 %vm2444_vm0, %v2443_v0  ;;  %2113 = vmatprep.subr.mxu1 %v2443_v0 }
 0x19b   : > { %2118 = vmatprep.subr.mxu0 %v2443_v0 }
 0x19c   : > { %2106 = vmatmul.mubr.msk.f32.vlgmr.msra.gmra.mxu1 %vm588_vm2, %v646_v20  ;;  %v647_v21 = vld [vmem:[#allocation2 + $0x10] sm:$0xff]  ;;  %v652_v22 = vld [vmem:[#allocation3 + $0x18] sm:$0xff]  ;;  %v1302_v20 = vld [vmem:[%s2952_s3 + $0x8] sm:$0xff] }
 0x19d   : > { %2111 = vmatmul.mubr.msk.f32.vlgmr.msra.gmra.mxu0 %vm588_vm2, %v647_v21  ;;  %2114 = vmatpush3.xpose.msk.msra.mxu1 %vm588_vm2, %v652_v22  ;;  %v1303_v21 = vld [vmem:[%s2952_s3 + $0x10] sm:$0xff] }
 0x19e   : > { %2115 = vmatprep.mubr.msk.f32.mxu1 %vm2444_vm0, %v2443_v0  ;;  %2123 = vmatprep.subr.mxu1 %v2443_v0 }
 0x19f   : > { %2120 = vmatprep.mubr.msk.f32.mxu0 %vm2444_vm0, %v2443_v0 }
 0x1a0   : > { %v648_v23 = vld [vmem:[#allocation2 + $0x18] sm:$0xff] }
 0x1a1   : > { %2116 = vmatmul.mubr.msk.f32.vlgmr.msra.gmra.mxu1 %vm588_vm2, %v648_v23 }
 0x1a2   : > { %2125 = vmatprep.mubr.msk.f32.mxu1 %vm2444_vm0, %v2443_v0 }
 0x258   : > { %v729_v25 = vpop.f32.mrf.mxu0 }
 0x259   : > { %v730_v26 = vadd.f32 %v729_v25, %v508_v24 }
 0x25a   : > { %v2102_v27 = vpop.f32.mrf.mxu0 }
 0x25b   : > { %v961_v28 = vsel %vm588_vm2, %v730_v26, -inf }
 0x25c   : > { %v805_v29 = vpop.f32.mrf.mxu1  ;;  %962 = vmax.xlane.f32.xlu1 %v961_v28 }
 0x25d   : > { %v806_v30 = vadd.f32 %v805_v29, %v508_v24  ;;  %v881_v31 = vpop.f32.mrf.mxu0 }
 0x25e   : > { %v2107_v32 = vpop.f32.mrf.mxu1  ;;  %v882_v33 = vadd.f32 %v881_v31, %v508_v24 }
 0x25f   : > { %v2112_v34 = vpop.f32.mrf.mxu0  ;;  %v964_v35 = vsel %vm588_vm2, %v806_v30, -inf }
 0x260   : > { %965 = vmax.xlane.f32.xlu0 %v964_v35  ;;  %v967_v39 = vsel %vm588_vm2, %v882_v33, -inf }
 0x261   : > { %v957_v36 = vpop.f32.mrf.mxu1 }
 0x262   : > { %v958_v37 = vadd.f32 %v957_v36, %v508_v24  ;;  %v1304_v24 = vld [vmem:[%s2952_s3 + $0x18] sm:$0xff] }
 0x263   : > { %v2117_v38 = vpop.f32.mrf.mxu1 }
 0x264   : > { %968 = vmax.xlane.f32.xlu0 %v967_v39  ;;  %v970_v40 = vsel %vm588_vm2, %v958_v37, -inf }
 0x265   : > { %971 = vmax.xlane.f32.xlu1 %v970_v40 }
 0x276   : > { %610 = vrot.lane.b32.xlu1 %v2696_v6, %s2452_s19  ;;  %s1858_s19 = scalar_lea.sflag [#allocation12], %s2654_s15 }
 0x27a   : > { %595 = vrot.lane.b32.xlu0 %v2696_v6, %s2453_s21  ;;  %s2341_s21 = scalar_lea.vmem %s2880_s22, 512 }
 0x27b   : > { %p2342_p9 = scmp.ne.s32.totalorder %s2880_s22, %s2341_s21 }
 0x27d   : > { %p2343_p13 = pnand %p2342_p9, %p2997_p11 }
 0x27f   : > { %p2344_p10 = pneg %p2343_p13 }
 0x2e5   : > { %v963_v41 = vpop.xlane.xlu1 %962 }
 0x2e6   : > { %v973_v42 = vsub.f32 %v730_v26, %v963_v41 }
 0x2e8   : > { %v977_v43 = vmul.f32 1.442695, %v973_v42 }
 0x2e9   : > { %v966_v44 = vpop.xlane.xlu0 %965 }
 0x2ea   : > { %2265 = vpow2.f32 %v977_v43  ;;  %v974_v45 = vsub.f32 %v806_v30, %v966_v44  ;;  %v2027_v44 = vld [vmem:[%s2953_s4] ss:$0 sm:$0xff] }
 0x2ec   : > { %v979_v46 = vmul.f32 1.442695, %v974_v45 }
 0x2ed   : > { %v969_v47 = vpop.xlane.xlu0 %968 }
 0x2ee   : > { %2267 = vpow2.f32 %v979_v46  ;;  %v975_v48 = vsub.f32 %v882_v33, %v969_v47  ;;  %v972_v49 = vpop.xlane.xlu1 %971 }
 0x2ef   : > { %v976_v50 = vsub.f32 %v958_v37, %v972_v49 }
 0x2f0   : > { %v981_v51 = vmul.f32 1.442695, %v975_v48 }
 0x2f1   : > { %v983_v52 = vmul.f32 1.442695, %v976_v50  ;;  %v596_v53 = vpop.permute.xlu0 %595 }
 0x2f2   : > { %2269 = vpow2.f32 %v981_v51  ;;  %598 = vst.msk [vmem:[#allocation4] sm:$0xff] %vm588_vm2, %v596_v53  ;;  %v611_v54 = vpop.permute.xlu1 %610 }
 0x2f3   : > { %2271 = vpow2.f32 %v983_v52  ;;  %614 = vst.msk [vmem:[#allocation4 + $0x8] sm:$0xff] %vm588_vm2, %v611_v54 }
 0x2f7   : > { %v2266_v55 = vpop.eup %2265 }
 0x2f8   : > { %v985_v56 = vsel %vm588_vm2, %v2266_v55, 0.0 }
 0x2f9   : > { %986 = vadd.xlane.f32.xlu0 %v985_v56  ;;  %v653_v57 = vld [vmem:[#allocation4] sm:$0xff]  ;;  %v1645_v56 = vld [vmem:[%s2956_s7 + $0x10] sm:$0xff] }
 0x2fa   : > { %2119 = vmatpush3.msra.mxu0 %v653_v57  ;;  %v654_v58 = vld [vmem:[#allocation4 + $0x8] sm:$0xff]  ;;  %v1643_v57 = vld [vmem:[%s2956_s7] sm:$0xff] }
 0x2fb   : > { %v2268_v59 = vpop.eup %2267  ;;  %2124 = vmatpush3.msra.mxu1 %v654_v58  ;;  %2128 = vmatprep.subr.mxu0 %v2443_v0 }
 0x2fc   : > { %v988_v60 = vsel %vm588_vm2, %v2268_v59, 0.0  ;;  %2133 = vmatprep.subr.mxu1 %v2443_v0 }
 0x2fd   : > { %989 = vadd.xlane.f32.xlu1 %v988_v60 }
 0x2ff   : > { %v2270_v61 = vpop.eup %2269 }
 0x300   : > { %v2272_v62 = vpop.eup %2271  ;;  %v991_v63 = vsel %vm588_vm2, %v2270_v61, 0.0 }
 0x301   : > { %992 = vadd.xlane.f32.xlu0 %v991_v63  ;;  %v994_v1 = vsel %vm588_vm2, %v2272_v62, 0.0 }
 0x302   : > { %995 = vadd.xlane.f32.xlu1 %v994_v1  ;;  %v2029_v1 = vld [vmem:[%s2955_s6] ss:$0 sm:$0xff] }
 0x313   : > { %625 = vrot.lane.b32.xlu1 %v2696_v6, %s2454_s18  ;;  %s2456_s18 = smov [#allocation11]  }
 0x317   : > { %640 = vrot.lane.b32.xlu0 %v2696_v6, %s2455_s23  ;;  %s2345_s23 = sshll.u32 %s2456_s18, 4  ;;  %s2346_s23 = int_to_ptr.vmem [resolvable:$false] %s2345_s23 }
 0x318   : > { %p2348_p1 = scmp.lt.s32.totalorder %s2880_s22, %s2346_s23 }
 0x382   : > { %v987_v2 = vpop.xlane.xlu0 %986 }
 0x383   : > { %2273 = vrcp.f32 %v987_v2 }
 0x386   : > { %v990_v3 = vpop.xlane.xlu1 %989 }
 0x387   : > { %2275 = vrcp.f32 %v990_v3 }
 0x38a   : > { %v993_v4 = vpop.xlane.xlu0 %992 }
 0x38b   : > { %2277 = vrcp.f32 %v993_v4  ;;  %v996_v7 = vpop.xlane.xlu1 %995  ;;  %v1739_v4 = vld [vmem:[%s2958_s9 + $0x38] sm:$0xff] }
 0x38c   : > { %2279 = vrcp.f32 %v996_v7  ;;  %v1738_v7 = vld [vmem:[%s2958_s9 + $0x30] sm:$0xff] }
 0x38e   : > { %v641_v8 = vpop.permute.xlu0 %640 }
 0x38f   : > { %644 = vst.msk [vmem:[#allocation4 + $0x18] sm:$0xff] %vm588_vm2, %v641_v8  ;;  %v626_v9 = vpop.permute.xlu1 %625  ;;  %v1737_v8 = vld [vmem:[%s2958_s9 + $0x28] sm:$0xff] }
 0x390   : > { %v2274_v10 = vpop.eup %2273  ;;  %629 = vst.msk [vmem:[#allocation4 + $0x10] sm:$0xff] %vm588_vm2, %v626_v9  ;;  %v1736_v9 = vld [vmem:[%s2958_s9 + $0x20] sm:$0xff] }
 0x391   : > { %v1001_v11 = vmul.f32 %v2274_v10, %v2266_v55  ;;  %v1646_v55 = vld [vmem:[%s2956_s7 + $0x18] sm:$0xff] }
 0x392   : > { %v1735_v10 = vld [vmem:[%s2958_s9 + $0x18] sm:$0xff] }
 0x393   : > { %1005 = vst.msk [vmem:[%s2750_s29] sm:$0xff] %vm588_vm2, %v1001_v11  ;;  %2121 = vmatmul.mubr.msk.f32.vlgmr.msra.gmra.mxu0 %vm588_vm2, %v1001_v11  ;;  %v1734_v11 = vld [vmem:[%s2958_s9 + $0x10] sm:$0xff] }
 0x394   : > { %v2276_v6 = vpop.eup %2275  ;;  %2130 = vmatprep.mubr.msk.f32.mxu0 %vm2444_vm0, %v2443_v0 }
 0x395   : > { %v1002_v12 = vmul.f32 %v2276_v6, %v2268_v59  ;;  %v1733_v6 = vld [vmem:[%s2958_s9 + $0x8] sm:$0xff] }
 0x396   : > { %v656_v13 = vld [vmem:[#allocation4 + $0x18] sm:$0xff] }
 0x397   : > { %1006 = vst.msk [vmem:[%s2750_s29 + $0x8] sm:$0xff] %vm588_vm2, %v1002_v12  ;;  %2126 = vmatmul.mubr.msk.f32.vlgmr.msra.gmra.mxu1 %vm588_vm2, %v1002_v12  ;;  %v655_v14 = vld [vmem:[#allocation4 + $0x10] sm:$0xff]  ;;  %v1732_v12 = vld [vmem:[%s2958_s9] sm:$0xff] }
 0x398   : > { %v2278_v15 = vpop.eup %2277  ;;  %2134 = vmatpush3.msra.mxu1 %v656_v13  ;;  %2129 = vmatpush3.msra.mxu0 %v655_v14  ;;  %v2030_v13 = vld [vmem:[%s2957_s8] ss:$0 sm:$0xff] }
 0x399   : > { %v2280_v16 = vpop.eup %2279  ;;  %v1003_v17 = vmul.f32 %v2278_v15, %v2270_v61  ;;  %2135 = vmatprep.mubr.msk.f32.mxu1 %vm2444_vm0, %v2443_v0  ;;  %2138 = vmatprep.subr.mxu0 %v2443_v0 }
 0x39a   : > { %v1004_v18 = vmul.f32 %v2280_v16, %v2272_v62  ;;  %2143 = vmatprep.subr.mxu1 %v2443_v0  ;;  %v2028_v62 = vld [vmem:[%s2954_s5] ss:$0 sm:$0xff] }
 0x39b   : > { %1007 = vst.msk [vmem:[%s2750_s29 + $0x10] sm:$0xff] %vm588_vm2, %v1003_v17  ;;  %2131 = vmatmul.mubr.msk.f32.vlgmr.msra.gmra.mxu0 %vm588_vm2, %v1003_v17 }
 0x39c   : > { %1008 = vst.msk [vmem:[%s2750_s29 + $0x18] sm:$0xff] %vm588_vm2, %v1004_v18  ;;  %2136 = vmatmul.mubr.msk.f32.vlgmr.msra.gmra.mxu1 %vm588_vm2, %v1004_v18  ;;  %2140 = vmatprep.mubr.msk.f32.mxu0 %vm2444_vm0, %v2443_v0  ;;  %s2347_s29 = scalar_lea.vmem %s2346_s23, 1024 }
 0x39d   : > { %2145 = vmatprep.mubr.msk.f32.mxu1 %vm2444_vm0, %v2443_v0  ;;  %2139 = vmatpush3.msra.mxu0 %v1301_v19  ;;  %p2349_p2 = scmp.lt.s32.totalorder %s2347_s29, %s2341_s21 }
 0x39e   : > { %2148 = vmatprep.subr.mxu0 %v2443_v0  ;;  %2144 = vmatpush3.msra.mxu1 %v1302_v20 }
 0x39f   : > { %2153 = vmatprep.subr.mxu1 %v2443_v0  ;;  %p2350_p0 = por %p2349_p2, %p2348_p1 }
 0x3a1   : > { %p2351_p3 = pnand %p2350_p0, %p2344_p10 }
 0x453   : > { %v1078_v22 = vpop.f32.mrf.mxu0 }
 0x454   : > { %2141 = vmatmul.mubr.msk.f32.vlgmr.msra.gmra.mxu0 %vm588_vm2, %v1078_v22 }
 0x455   : > { %v2122_v23 = vpop.f32.mrf.mxu0  ;;  %2149 = vmatpush3.msra.mxu0 %v1303_v21  ;;  %2150 = vmatprep.mubr.msk.f32.mxu0 %vm2444_vm0, %v2443_v0 }
 0x456   : > { %2158 = vmatprep.subr.mxu0 %v2443_v0 }
 0x457   : > { %v1151_v25 = vpop.f32.mrf.mxu1 }
 0x458   : > { %2146 = vmatmul.mubr.msk.f32.vlgmr.msra.gmra.mxu1 %vm588_vm2, %v1151_v25 }
 0x459   : > { %v2127_v26 = vpop.f32.mrf.mxu1  ;;  %2154 = vmatpush3.msra.mxu1 %v1304_v24  ;;  %2155 = vmatprep.mubr.msk.f32.mxu1 %vm2444_vm0, %v2443_v0 }
 0x45a   : > { %2169 = vmatprep.subr.mxu1 %v2443_v0 }
 0x45b   : > { %v1224_v27 = vpop.f32.mrf.mxu0 }
 0x45c   : > { %v1297_v28 = vpop.f32.mrf.mxu1  ;;  %2151 = vmatmul.mubr.msk.f32.vlgmr.msra.gmra.mxu0 %vm588_vm2, %v1224_v27 }
 0x45d   : > { %v2132_v29 = vpop.f32.mrf.mxu0  ;;  %2156 = vmatmul.mubr.msk.f32.vlgmr.msra.gmra.mxu1 %vm588_vm2, %v1297_v28  ;;  %2166 = vmatprep.mubr.msk.f32.mxu0 %vm2444_vm0, %v2443_v0 }
 0x45e   : > { %v2137_v30 = vpop.f32.mrf.mxu1  ;;  %2185 = vmatprep.mubr.msk.f32.mxu1 %vm2444_vm0, %v2443_v0  ;;  %2159 = vmatpush3.msra.mxu0 %v1646_v55 }
 0x45f   : > { %2160 = vmatprep.subr.mxu0 %v2443_v0  ;;  %2170 = vmatpush3.msra.mxu1 %v1739_v4 }
 0x460   : > { %2161 = vmatpush3.msra.mxu0 %v1645_v56  ;;  %2171 = vmatprep.subr.mxu1 %v2443_v0 }
 0x461   : > { %2162 = vmatprep.subr.mxu0 %v2443_v0  ;;  %2172 = vmatpush3.msra.mxu1 %v1738_v7 }
 0x462   : > { %2173 = vmatprep.subr.mxu1 %v2443_v0 }
 0x463   : > { %2174 = vmatpush3.msra.mxu1 %v1737_v8 }
 0x464   : > { %2175 = vmatprep.subr.mxu1 %v2443_v0 }
 0x465   : > { %2176 = vmatpush3.msra.mxu1 %v1736_v9 }
 0x466   : > { %2177 = vmatprep.subr.mxu1 %v2443_v0 }
 0x467   : > { %2178 = vmatpush3.msra.mxu1 %v1735_v10 }
 0x468   : > { %2179 = vmatprep.subr.mxu1 %v2443_v0 }
 0x469   : > { %2180 = vmatpush3.msra.mxu1 %v1734_v11 }
 0x46a   : > { %2181 = vmatprep.subr.mxu1 %v2443_v0 }
 0x46b   : > { %2182 = vmatpush3.msra.mxu1 %v1733_v6 }
 0x46c   : > { %2183 = vmatprep.subr.mxu1 %v2443_v0 }
 0x46d   : > { %2184 = vmatpush3.msra.mxu1 %v1732_v12 }
 0x514   : > { %v1374_v31 = vpop.f32.mrf.mxu0 }
 0x515   : > { %v1597_v36 = vsel %vm513_vm1, %v1374_v31, 0.0 }
 0x516   : > { %v2142_v32 = vpop.f32.mrf.mxu0 }
 0x518   : > { %v1447_v33 = vpop.f32.mrf.mxu1 }
 0x519   : > { %v1598_v34 = vsel %vm513_vm1, %v1447_v33, 0.0 }
 0x51a   : > { %v2147_v35 = vpop.f32.mrf.mxu1  ;;  %v1599_v37 = vadd.f32 %v1598_v34, %v1597_v36 }
 0x51c   : > { %v1520_v38 = vpop.f32.mrf.mxu0 }
 0x51d   : > { %v1600_v39 = vsel %vm513_vm1, %v1520_v38, 0.0  ;;  %v1593_v40 = vpop.f32.mrf.mxu1 }
 0x51e   : > { %v1601_v41 = vadd.f32 %v1600_v39, %v1599_v37  ;;  %v1602_v42 = vsel %vm513_vm1, %v1593_v40, 0.0  ;;  %v2152_v43 = vpop.f32.mrf.mxu0 }
 0x51f   : > { %v2157_v45 = vpop.f32.mrf.mxu1 }
 0x520   : > { %v1603_v46 = vadd.f32 %v1602_v42, %v1601_v41 }
 0x522   : > { %v1611_v47 = vadd.f32 %v2027_v44, %v1603_v46 }
 0x524   : > { %v1612_v48 = vadd.f32 %v1611_v47, %v2688_v5  ;;  %v1644_v5 = vld [vmem:[%s2956_s7 + $0x8] sm:$0xff] }
 0x525   : > { %2163 = vmatpush3.msra.mxu0 %v1644_v5 }
 0x526   : > { %v1615_v49 = vsel %vm513_vm1, %v1612_v48, 0.0  ;;  %2164 = vmatprep.subr.mxu0 %v2443_v0  ;;  %v2032_v0 = vld [vmem:[%s2959_s10] ss:$0 sm:$0xff] }
 0x527   : > { %1616 = vadd.xlane.f32.xlu1 %v1615_v49  ;;  %2165 = vmatpush3.msra.mxu0 %v1643_v57 }
 0x5b0   : > { %v1617_v50 = vpop.xlane.xlu1 %1616 }
 0x5b1   : > { %v1619_v51 = vmul.f32 0.03125, %v1617_v50 }
 0x5b3   : > { %v1620_v52 = vsub.f32 %v1612_v48, %v1619_v51 }
 0x5b5   : > { %v1621_v53 = vmul.f32 %v1620_v52, %v1620_v52 }
 0x5b7   : > { %v1622_v54 = vsel %vm513_vm1, %v1621_v53, 0.0 }
 0x5b8   : > { %1623 = vadd.xlane.f32.xlu0 %v1622_v54 }
 0x641   : > { %v1624_v58 = vpop.xlane.xlu0 %1623 }
 0x642   : > { %v1625_v59 = vmul.f32 0.03125, %v1624_v58 }
 0x644   : > { %v1626_v60 = vadd.f32 1e-05, %v1625_v59 }
 0x646   : > { %2281 = vrsqrt.f32 %v1626_v60 }
 0x653   : > { %v2282_v61 = vpop.eup %2281 }
 0x654   : > { %v1628_v63 = vmul.f32 %v2282_v61, %v1620_v52 }
 0x656   : > { %v1635_v2 = vmul.f32 %v2028_v62, %v1628_v63 }
 0x658   : > { %v1642_v3 = vadd.f32 %v2029_v1, %v1635_v2 }
 0x65a   : > { %2167 = vmatmul.mubr.msk.f32.vlgmr.msra.gmra.mxu0 %vm513_vm1, %v1642_v3 }
 0x71a   : > { %v1723_v14 = vpop.f32.mrf.mxu0 }
 0x71b   : > { %v1724_v15 = vadd.f32 %v2030_v13, %v1723_v14 }
 0x71c   : > { %v2168_v16 = vpop.f32.mrf.mxu0 }
 0x71d   : > { %v1728_v17 = vmul.f32 0.70710677, %v1724_v15  ;;  %v1727_v19 = vmul.f32 0.5, %v1724_v15 }
 0x71f   : > { %2283 = verf.f32 %v1728_v17 }
 0x72c   : > { %v2284_v18 = vpop.eup %2283 }
 0x72d   : > { %v1730_v20 = vadd.f32 1.0, %v2284_v18 }
 0x72f   : > { %v1731_v21 = vmul.f32 %v1730_v20, %v1727_v19 }
 0x731   : > { %2186 = vmatmul.mubr.msk.f32.vlgmr.msra.gmra.mxu1 %vm1747_vm3, %v1731_v21 }
 0x7f1   : > { %v1817_v22 = vpop.f32.mrf.mxu1 }
 0x7f2   : > { %v1818_v23 = vadd.f32 %v2032_v0, %v1817_v22 }
 0x7f3   : > { %v2187_v24 = vpop.f32.mrf.mxu1 }
 0x7f4   : > { %v1821_v25 = vadd.f32 %v1818_v23, %v1642_v3 }
 0x7f6   : > { %v1824_v26 = vsel %vm513_vm1, %v1821_v25, 0.0 }
 0x7f7   : > { %1825 = vadd.xlane.f32.xlu0 %v1824_v26 }
 0x880   : > { %v1826_v27 = vpop.xlane.xlu0 %1825 }
 0x881   : > { %v1827_v28 = vmul.f32 0.03125, %v1826_v27 }
 0x883   : > { %v1828_v29 = vsub.f32 %v1821_v25, %v1827_v28 }
 0x885   : > { %v1829_v30 = vmul.f32 %v1828_v29, %v1828_v29 }
 0x887   : > { %v1830_v31 = vsel %vm513_vm1, %v1829_v30, 0.0 }
 0x888   : > { %1831 = vadd.xlane.f32.xlu1 %v1830_v31 }
 0x889   : > { %2354 = shalt.err (!%p2351_p3)
}
 0x88a   : > { %s2355_s28 = scalar_lea.hbm %s2878_s1, 512  ;;  %s2359_s26 = scalar_lea.hbm %s2963_s14, 1024 }
 0x88b   : > { %p2356_p12 = scmp.ne.s32.totalorder %s2878_s1, %s2355_s28  ;;  %p2360_p4 = scmp.lt.s32.totalorder %s2878_s1, %s2963_s14 }
 0x88c   : > { %p2361_p6 = scmp.lt.s32.totalorder %s2359_s26, %s2355_s28 }
 0x88d   : > { %p2357_p5 = pnand %p2356_p12, %p2997_p11 }
 0x88e   : > { %p2362_p8 = por %p2361_p6, %p2360_p4 }
 0x88f   : > { %p2358_p7 = pneg %p2357_p5 }
 0x891   : > { %p2363_p9 = pnand %p2362_p8, %p2358_p7 }
 0x893   : > { %2366 = shalt.err (!%p2363_p9)
}
 0x894   : > { %s2457_s12 = smov 128   ;;  %s2458_s21 = smov 8   ;;  %v2034_v36 = vld [vmem:[%s2960_s11] ss:$0 sm:$0xff] }
 0x895   : > { %2195 = dma.vmem_to_hbm [thread:$0]  (%p2997_p11), %s2880_s22, 512, %s2878_s1, %s1858_s19, %s2457_s12, %s2457_s12, %s2458_s21  }
 0x896   : > { %s2998_s20 = sld [smem:[#allocation24_spill]]  ;;  %s2038_s24 = sshll.u32 %s2556_s17, 7 }
 0x897   : > { %s499_s26 = scalar_lea.vmem [#allocation10], %s2006_s16  ;;  %s2999_s27 = sld [smem:[#allocation25_spill]] }
 0x898   : > { %s1871_s22 = sshll.u32 %s499_s26, 4  ;;  %s1853_s12 = scalar_lea.sflag [#allocation7], %s2654_s15  ;;  %s1872_s22 = int_to_ptr.vmem [resolvable:$true] %s1871_s22 }
 0x899   : > { %s2367_s21 = scalar_lea.vmem %s1872_s22, 128  ;;  %s2459_s18 = smov [#allocation10]  }
 0x89a   : > { %p2368_p13 = scmp.ne.s32.totalorder %s1872_s22, %s2367_s21  ;;  %s2371_s17 = sshll.u32 %s2459_s18, 4  ;;  %s2372_s17 = int_to_ptr.vmem [resolvable:$false] %s2371_s17 }
 0x89b   : > { %s2373_s16 = scalar_lea.vmem %s2372_s17, 256  ;;  %p2374_p2 = scmp.lt.s32.totalorder %s1872_s22, %s2372_s17 }
 0x89c   : > { %v2035_v38 = vld [vmem:[%s2998_s20] ss:$0 sm:$0xff]  ;;  %p2369_p10 = pnand %p2368_p13, %p2997_p11  ;;  %p2375_p0 = scmp.lt.s32.totalorder %s2373_s16, %s2367_s21 }
 0x89d   : > { %s1869_s13 = scalar_lea.hbm %s2999_s27, %s2038_s24 }
 0x89e   : > { %p2370_p1 = pneg %p2369_p10  ;;  %p2376_p3 = por %p2375_p0, %p2374_p2 }
 0x8a0   : > { %p2377_p12 = pnand %p2376_p3, %p2370_p1 }
 0x911   : > { %v1832_v32 = vpop.xlane.xlu1 %1831 }
 0x912   : > { %v1833_v33 = vmul.f32 0.03125, %v1832_v32 }
 0x914   : > { %v1834_v34 = vadd.f32 1e-05, %v1833_v33 }
 0x916   : > { %2285 = vrsqrt.f32 %v1834_v34 }
 0x923   : > { %v2286_v35 = vpop.eup %2285 }
 0x924   : > { %v1836_v37 = vmul.f32 %v2286_v35, %v1828_v29 }
 0x926   : > { %v1843_v39 = vmul.f32 %v2034_v36, %v1836_v37 }
 0x928   : > { %v1850_v40 = vadd.f32 %v2035_v38, %v1843_v39 }
 0x92a   : > { %1851 = vst.msk [vmem:[%s499_s26] sm:$0xff] %vm513_vm1, %v1850_v40 }
 0x92b   : > { %2380 = shalt.err (!%p2377_p12)
}
 0x92c   : > { %s2381_s23 = scalar_lea.hbm %s1869_s13, 128  ;;  %s2385_s28 = scalar_lea.hbm %s2999_s27, 256 }
 0x92d   : > { %p2382_p5 = scmp.ne.s32.totalorder %s1869_s13, %s2381_s23  ;;  %p2386_p6 = scmp.lt.s32.totalorder %s1869_s13, %s2999_s27 }
 0x92e   : > { %p2387_p8 = scmp.lt.s32.totalorder %s2385_s28, %s2381_s23 }
 0x92f   : > { %p2383_p7 = pnand %p2382_p5, %p2997_p11 }
 0x930   : > { %p2388_p9 = por %p2387_p8, %p2386_p6 }
 0x931   : > { %p2384_p4 = pneg %p2383_p7 }
 0x933   : > { %p2389_p13 = pnand %p2388_p9, %p2384_p4 }
 0x935   : > { %2392 = shalt.err (!%p2389_p13)
}
 0x936   : > { %2194 = dma.vmem_to_hbm [thread:$0]  (%p2997_p11), %s1872_s22, 128, %s1869_s13, %s1853_s12  }
 0x937 PF: > { %s3000_s26 = sld [smem:[#allocation17_spill]] }
 0x938   : > { %s3001_s1 = sld [smem:[#allocation20_spill]] }
 0x939   : > { %s3002_s19 = sld [smem:[#allocation19_spill]] }
 0x93d   : > { %s1899_s21 = sand.u32 1, %s3000_s26  }
 0x93e   : > { %p3003_p10 = scmp.ne.s32.totalorder %s3001_s1, 0  ;;  %s1900_s18 = scalar_lea.sflag [#allocation7], %s1899_s21 }
 0x93f   : > { %p3004_p1 = scmp.ge.s32.totalorder %s3002_s19, 2 }
 0x941   : > { %p2207_p2 = pnand %p3004_p1, %p3003_p10 }
 0x943   : > { %p2208_p0 = pneg %p2207_p2 }
 0x945   : > { %2418 = dma.done.wait (%p2208_p0), %s1900_s18, 128  }
 0x946   : > { %2420 = vsyncadd (%p2208_p0), %s1900_s18, 4294967168  ;;  %s1909_s17 = scalar_lea.sflag [#allocation12], %s1899_s21 }
 0x947   : > { %2422 = dma.done.wait (%p2208_p0), %s1909_s17, 512  }
 0x948   : > { %2424 = vsyncadd (%p2208_p0), %s1909_s17, 4294966784  ;;  %s3005_s16 = sld [smem:[#allocation21_spill]]  ;;  %s3008_s29 = smov %s2431_s30 }
 0x949   : > { %s3006_s23 = sld [smem:[#allocation18_spill]] }
 0x94a   : > { %s3007_s15 = sld [smem:[#allocation22_spill]] }
 0x94e   : > { %p32_p11 = scmp.ge.s32.totalorder %s3005_s16, 4  }
 0x94f   : > { %s3009_s30 = smov %s3006_s23 }
 0x950   :  { %34 = sbr.rel (!%p32_p11) target bundleno = 12 (0xc), region = 147 }
 0x955   :  { %1914 = vsyncpa [#allocation6], 1 }
 0x956   :  { %1916 = vsyncpa [#allocation6 + $0x1], 1 }
 0x957   :  { %1917 = vsyncpa [#allocation9], 1 }
 0x958   :  { %1918 = vsyncpa [#allocation7], 1 }
 0x959   :  { %1920 = vsyncpa [#allocation7 + $0x1], 1 }
 0x95a   :  { %1921 = vsyncpa [#allocation12], 1 }
 0x95b   :  { %1923 = vsyncpa [#allocation12 + $0x1], 1 }

</bundles_post_ra>
